<compile_context>
chip_gen: v5e
topology: v5e:2x2
jax: 0.10.0
libtpu: 0.0.40
codegen_flags: <defaults>
</compile_context>

<pallas_src>
import math

import jax
import jax.numpy as jnp
from jax.experimental import pallas as pl
from jax.experimental.pallas import tpu as pltpu


def _make_decoder_kernel(num_layers, hidden_size, in_dim_max):
    """Fused kernel: L stacked GRU cells (one step) + FC head, all in VMEM."""
    H = hidden_size

    def kernel(x_ref, h_ref, w_i_ref, w_h_ref, b_ref, w_fc_ref, b_fc_ref,
               out_ref, h_out_ref):
        # ---- Hoisted recurrent-side matvecs: gh_l depends only on h_in[l],
        #      so issue all of them back-to-back (off the serial x chain).
        hs, bi, gh = [], [], []
        for l in range(num_layers):                     # statically unrolled (L small)
            h_l = h_ref[l]                              # (1, H)
            b_l = b_ref[l]                              # (2, 3H) = [b_ih; b_hh]
            hs.append(h_l)
            bi.append(b_l[0:1, :])
            gh.append(
                jnp.dot(h_l, w_h_ref[l], preferred_element_type=jnp.float32)
                + b_l[1:2, :])                          # (1, 3H)

        # ---- Serial chain: one fused x-side matvec per layer + gate math.
        x = x_ref[...]                                  # (1, in_dim_max), zero-padded
        h_top = None
        for l in range(num_layers):
            gi = (jnp.dot(x, w_i_ref[l], preferred_element_type=jnp.float32)
                  + bi[l])                              # (1, 3H)
            gh_l = gh[l]
            r = jax.nn.sigmoid(gi[:, 0:H] + gh_l[:, 0:H])
            z = jax.nn.sigmoid(gi[:, H:2 * H] + gh_l[:, H:2 * H])
            n = jnp.tanh(gi[:, 2 * H:3 * H] + r * gh_l[:, 2 * H:3 * H])

            h_new = (1.0 - z) * n + z * hs[l]           # (1, H)
            h_out_ref[l] = h_new
            h_top = h_new
            # Inter-layer dropout is an eval-mode identity (not applied).
            if in_dim_max > H:                          # only if output_size > H
                x = jnp.concatenate(
                    [h_new, jnp.zeros((1, in_dim_max - H), jnp.float32)], axis=1)
            else:
                x = h_new

        out_ref[...] = (
            jnp.dot(h_top, w_fc_ref[...], preferred_element_type=jnp.float32)
            + b_fc_ref[...])

    return kernel


# ----------------------------- Module wrapper ------------------------------ #

class DecoderRNNAttributesPallas:
    def __init__(self, output_size, hidden_size, num_layers, dropout, key):
        self.output_size = output_size
        self.hidden_size = hidden_size
        self.num_layers = num_layers
        self.dropout = dropout  # eval-mode: identity

        H = hidden_size
        k = 1.0 / math.sqrt(hidden_size)
        raw = {}
        keys = jax.random.split(key, 4 * num_layers + 2)
        ki = 0
        for layer in range(num_layers):
            in_dim = output_size if layer == 0 else hidden_size
            raw[f"w_ih_l{layer}"] = jax.random.uniform(
                keys[ki], (3 * H, in_dim), jnp.float32, -k, k); ki += 1
            raw[f"w_hh_l{layer}"] = jax.random.uniform(
                keys[ki], (3 * H, H), jnp.float32, -k, k); ki += 1
            raw[f"b_ih_l{layer}"] = jax.random.uniform(
                keys[ki], (3 * H,), jnp.float32, -k, k); ki += 1
            raw[f"b_hh_l{layer}"] = jax.random.uniform(
                keys[ki], (3 * H,), jnp.float32, -k, k); ki += 1
        kf = 1.0 / math.sqrt(hidden_size)
        raw["w_fc"] = jax.random.uniform(
            keys[ki], (output_size, H), jnp.float32, -kf, kf); ki += 1
        raw["b_fc"] = jax.random.uniform(
            keys[ki], (output_size,), jnp.float32, -kf, kf); ki += 1
        self.raw = raw  # PyTorch-layout params (for the pure-JAX reference)

        # --- one-time preprocessing: pack params into 5 stacked slabs ----------
        # All layers share one (L, In, 3H) input-weight slab; layer 0's (out, 3H)
        # block (and, if output_size > H, the later layers' (H, 3H) blocks) are
        # zero-padded along the contraction dim, which contributes exactly 0.
        In = max(output_size, hidden_size)
        self._in_dim_max = In
        w_i_slabs, w_h_slabs, b_slabs = [], [], []
        for layer in range(num_layers):
            in_dim = output_size if layer == 0 else H
            wi_t = jnp.transpose(raw[f"w_ih_l{layer}"])          # (in_dim, 3H)
            if in_dim < In:
                wi_t = jnp.pad(wi_t, ((0, In - in_dim), (0, 0)))
            w_i_slabs.append(wi_t)                               # (In, 3H)
            w_h_slabs.append(jnp.transpose(raw[f"w_hh_l{layer}"]))  # (H, 3H)
            b_slabs.append(jnp.stack(
                [raw[f"b_ih_l{layer}"], raw[f"b_hh_l{layer}"]], axis=0))  # (2, 3H)
        w_i = jnp.stack(w_i_slabs).astype(jnp.float32)           # (L, In, 3H)
        w_h = jnp.stack(w_h_slabs).astype(jnp.float32)           # (L, H, 3H)
        b = jnp.stack(b_slabs).astype(jnp.float32)               # (L, 2, 3H)
        w_fc = jnp.transpose(raw["w_fc"]).astype(jnp.float32)    # (H, out)
        b_fc = raw["b_fc"].reshape(1, -1).astype(jnp.float32)    # (1, out)
        self.kernel_params = (w_i, w_h, b, w_fc, b_fc)

        vmem = lambda: pl.BlockSpec(memory_space=pltpu.MemorySpace.VMEM)
        fused_call = pl.pallas_call(
            _make_decoder_kernel(num_layers, hidden_size, In),
            out_shape=(
                jax.ShapeDtypeStruct((1, output_size), jnp.float32),
                jax.ShapeDtypeStruct((num_layers, 1, hidden_size), jnp.float32),
            ),
            in_specs=[vmem() for _ in range(7)],
            out_specs=(vmem(), vmem()),
            # hidden (input 1) aliases the new hidden (output 1); each h[l] is
            # fully read before h_out[l] is written, so this is safe.
            input_output_aliases={1: 1},
        )

        def _step(inp, hidden, w_i_, w_h_, b_, w_fc_, b_fc_):
            x = jnp.reshape(inp, (1, -1)).astype(jnp.float32)    # view(1,1,-1)
            if In > output_size:
                x = jnp.pad(x, ((0, 0), (0, In - output_size)))
            h = hidden.astype(jnp.float32)                       # (L, 1, H)
            return fused_call(x, h, w_i_, w_h_, b_, w_fc_, b_fc_)

        # Single executable per decode step; hidden buffer is donated so the
        # aliased state update happens in place.
        self._step = jax.jit(_step, donate_argnums=(1,))

    def __call__(self, inp, hidden):
        """inp: any shape reshapeable to (output_size,); hidden: (L, 1, H).

        NOTE: `hidden` is donated (updated in place); do not reuse it afterwards.
        """
        return self._step(inp, hidden, *self.kernel_params)

    # Pure-JAX reference of the same math (PyTorch GRU + Linear), for checking.
    def reference(self, inp, hidden):
        p = self.raw
        H = self.hidden_size
        x = jnp.reshape(inp, (1, -1)).astype(jnp.float32)
        new_hidden = []
        for layer in range(self.num_layers):
            h = hidden[layer].astype(jnp.float32)
            gi = x @ p[f"w_ih_l{layer}"].T + p[f"b_ih_l{layer}"]
            gh = h @ p[f"w_hh_l{layer}"].T + p[f"b_hh_l{layer}"]
            r = jax.nn.sigmoid(gi[:, 0:H] + gh[:, 0:H])
            z = jax.nn.sigmoid(gi[:, H:2 * H] + gh[:, H:2 * H])
            n = jnp.tanh(gi[:, 2 * H:3 * H] + r * gh[:, 2 * H:3 * H])
            h = (1.0 - z) * n + z * h
            new_hidden.append(h)
            x = h
        out = x @ p["w_fc"].T + p["b_fc"]
        return out, jnp.stack(new_hidden, axis=0)


# --------------------------------- Main ------------------------------------ #

if __name__ == "__main__":
    output_size, hidden_size, num_layers, dropout = 16, 32, 2, 0.0

    key = jax.random.PRNGKey(0)
    k_param, k_in, k_h = jax.random.split(key, 3)

    model = DecoderRNNAttributesPallas(output_size, hidden_size, num_layers,
                                       dropout, k_param)

    inp = jax.random.normal(k_in, (output_size,), jnp.float32)          # view(1,1,-1)
    hidden = jax.random.normal(k_h, (num_layers, 1, hidden_size), jnp.float32)

    # Reference first: `hidden` is donated to the Pallas step below.
    out_ref, hid_ref = model.reference(inp, hidden)

    out, hid = model(inp, hidden)
    out = jax.block_until_ready(out)
    hid = jax.block_until_ready(hid)

    assert out.shape == (1, output_size)
    assert hid.shape == (num_layers, 1, hidden_size)
    assert jnp.allclose(out, out_ref, atol=1e-5, rtol=1e-5)
    assert jnp.allclose(hid, hid_ref, atol=1e-5, rtol=1e-5)

    print("KERNEL_OK")
</pallas_src>

<mosaic_0001>
module attributes {stable_mosaic.version = 11 : i64} {
  func.func @kernel(%arg0: memref<1x32xf32, #tpu.memory_space<vmem>>, %arg1: memref<2x1x32xf32, #tpu.memory_space<vmem>>, %arg2: memref<2x32x96xf32, #tpu.memory_space<vmem>>, %arg3: memref<2x32x96xf32, #tpu.memory_space<vmem>>, %arg4: memref<2x2x96xf32, #tpu.memory_space<vmem>>, %arg5: memref<32x16xf32, #tpu.memory_space<vmem>>, %arg6: memref<1x16xf32, #tpu.memory_space<vmem>>, %arg7: memref<1x16xf32, #tpu.memory_space<vmem>>, %arg8: memref<2x1x32xf32, #tpu.memory_space<vmem>>) attributes {dimension_semantics = [], scalar_prefetch = 0 : i64, scratch_operands = 0 : i64, tpu.core_type = #tpu.core_type<tc>} {
    %c0 = arith.constant 0 : index
    %c0_0 = arith.constant 0 : index
    %c0_1 = arith.constant 0 : index
    %0 = vector.load %arg1[%c0, %c0_0, %c0_1] : memref<2x1x32xf32, #tpu.memory_space<vmem>>, vector<1x1x32xf32>
    %1 = vector.shape_cast %0 : vector<1x1x32xf32> to vector<1x32xf32>
    %c0_2 = arith.constant 0 : index
    %c0_3 = arith.constant 0 : index
    %c0_4 = arith.constant 0 : index
    %2 = vector.load %arg4[%c0_2, %c0_3, %c0_4] : memref<2x2x96xf32, #tpu.memory_space<vmem>>, vector<1x2x96xf32>
    %3 = vector.shape_cast %2 : vector<1x2x96xf32> to vector<2x96xf32>
    %4 = vector.extract_strided_slice %3 {offsets = [0, 0], sizes = [1, 96], strides = [1, 1]} : vector<2x96xf32> to vector<1x96xf32>
    %c0_5 = arith.constant 0 : index
    %c0_6 = arith.constant 0 : index
    %c0_7 = arith.constant 0 : index
    %5 = vector.load %arg3[%c0_5, %c0_6, %c0_7] : memref<2x32x96xf32, #tpu.memory_space<vmem>>, vector<1x32x96xf32>
    %6 = vector.shape_cast %5 : vector<1x32x96xf32> to vector<32x96xf32>
    %cst = arith.constant dense<0.000000e+00> : vector<1x96xf32>
    %7 = tpu.matmul %1, %6, %cst {dimension_numbers = #tpu.dot_dimension_numbers<[1], [0], [0], [1], [0, 0, 1, 1], [], []>} : vector<1x32xf32>, vector<32x96xf32>, vector<1x96xf32> -> vector<1x96xf32>
    %8 = vector.extract_strided_slice %3 {offsets = [1, 0], sizes = [1, 96], strides = [1, 1]} : vector<2x96xf32> to vector<1x96xf32>
    %9 = arith.addf %7, %8 : vector<1x96xf32>
    %c1 = arith.constant 1 : index
    %c0_8 = arith.constant 0 : index
    %c0_9 = arith.constant 0 : index
    %10 = vector.load %arg1[%c1, %c0_8, %c0_9] : memref<2x1x32xf32, #tpu.memory_space<vmem>>, vector<1x1x32xf32>
    %11 = vector.shape_cast %10 : vector<1x1x32xf32> to vector<1x32xf32>
    %c1_10 = arith.constant 1 : index
    %c0_11 = arith.constant 0 : index
    %c0_12 = arith.constant 0 : index
    %12 = vector.load %arg4[%c1_10, %c0_11, %c0_12] : memref<2x2x96xf32, #tpu.memory_space<vmem>>, vector<1x2x96xf32>
    %13 = vector.shape_cast %12 : vector<1x2x96xf32> to vector<2x96xf32>
    %14 = vector.extract_strided_slice %13 {offsets = [0, 0], sizes = [1, 96], strides = [1, 1]} : vector<2x96xf32> to vector<1x96xf32>
    %c1_13 = arith.constant 1 : index
    %c0_14 = arith.constant 0 : index
    %c0_15 = arith.constant 0 : index
    %15 = vector.load %arg3[%c1_13, %c0_14, %c0_15] : memref<2x32x96xf32, #tpu.memory_space<vmem>>, vector<1x32x96xf32>
    %16 = vector.shape_cast %15 : vector<1x32x96xf32> to vector<32x96xf32>
    %cst_16 = arith.constant dense<0.000000e+00> : vector<1x96xf32>
    %17 = tpu.matmul %11, %16, %cst_16 {dimension_numbers = #tpu.dot_dimension_numbers<[1], [0], [0], [1], [0, 0, 1, 1], [], []>} : vector<1x32xf32>, vector<32x96xf32>, vector<1x96xf32> -> vector<1x96xf32>
    %18 = vector.extract_strided_slice %13 {offsets = [1, 0], sizes = [1, 96], strides = [1, 1]} : vector<2x96xf32> to vector<1x96xf32>
    %19 = arith.addf %17, %18 : vector<1x96xf32>
    %c0_17 = arith.constant 0 : index
    %c0_18 = arith.constant 0 : index
    %20 = vector.load %arg0[%c0_17, %c0_18] : memref<1x32xf32, #tpu.memory_space<vmem>>, vector<1x32xf32>
    %c0_19 = arith.constant 0 : index
    %c0_20 = arith.constant 0 : index
    %c0_21 = arith.constant 0 : index
    %21 = vector.load %arg2[%c0_19, %c0_20, %c0_21] : memref<2x32x96xf32, #tpu.memory_space<vmem>>, vector<1x32x96xf32>
    %22 = vector.shape_cast %21 : vector<1x32x96xf32> to vector<32x96xf32>
    %cst_22 = arith.constant dense<0.000000e+00> : vector<1x96xf32>
    %23 = tpu.matmul %20, %22, %cst_22 {dimension_numbers = #tpu.dot_dimension_numbers<[1], [0], [0], [1], [0, 0, 1, 1], [], []>} : vector<1x32xf32>, vector<32x96xf32>, vector<1x96xf32> -> vector<1x96xf32>
    %24 = arith.addf %23, %4 : vector<1x96xf32>
    %25 = vector.extract_strided_slice %24 {offsets = [0, 0], sizes = [1, 32], strides = [1, 1]} : vector<1x96xf32> to vector<1x32xf32>
    %26 = vector.extract_strided_slice %9 {offsets = [0, 0], sizes = [1, 32], strides = [1, 1]} : vector<1x96xf32> to vector<1x32xf32>
    %27 = arith.addf %25, %26 : vector<1x32xf32>
    %28 = arith.negf %27 : vector<1x32xf32>
    %29 = math.exp %28 : vector<1x32xf32>
    %cst_23 = arith.constant 1.000000e+00 : f32
    %30 = vector.broadcast %cst_23 : f32 to vector<1x32xf32>
    %31 = arith.addf %30, %29 : vector<1x32xf32>
    %32 = arith.divf %30, %31 : vector<1x32xf32>
    %33 = vector.extract_strided_slice %24 {offsets = [0, 32], sizes = [1, 32], strides = [1, 1]} : vector<1x96xf32> to vector<1x32xf32>
    %34 = vector.extract_strided_slice %9 {offsets = [0, 32], sizes = [1, 32], strides = [1, 1]} : vector<1x96xf32> to vector<1x32xf32>
    %35 = arith.addf %33, %34 : vector<1x32xf32>
    %36 = arith.negf %35 : vector<1x32xf32>
    %37 = math.exp %36 : vector<1x32xf32>
    %cst_24 = arith.constant 1.000000e+00 : f32
    %38 = vector.broadcast %cst_24 : f32 to vector<1x32xf32>
    %39 = arith.addf %38, %37 : vector<1x32xf32>
    %40 = arith.divf %38, %39 : vector<1x32xf32>
    %41 = vector.extract_strided_slice %24 {offsets = [0, 64], sizes = [1, 32], strides = [1, 1]} : vector<1x96xf32> to vector<1x32xf32>
    %42 = vector.extract_strided_slice %9 {offsets = [0, 64], sizes = [1, 32], strides = [1, 1]} : vector<1x96xf32> to vector<1x32xf32>
    %43 = arith.mulf %32, %42 : vector<1x32xf32>
    %44 = arith.addf %41, %43 : vector<1x32xf32>
    %45 = math.tanh %44 : vector<1x32xf32>
    %cst_25 = arith.constant 1.000000e+00 : f32
    %46 = vector.broadcast %cst_25 : f32 to vector<1x32xf32>
    %47 = arith.subf %46, %40 : vector<1x32xf32>
    %48 = arith.mulf %47, %45 : vector<1x32xf32>
    %49 = arith.mulf %40, %1 : vector<1x32xf32>
    %50 = arith.addf %48, %49 : vector<1x32xf32>
    %c0_26 = arith.constant 0 : index
    %c0_27 = arith.constant 0 : index
    %c0_28 = arith.constant 0 : index
    %51 = vector.load %arg8[%c0_26, %c0_27, %c0_28] : memref<2x1x32xf32, #tpu.memory_space<vmem>>, vector<1x1x32xf32>
    %52 = vector.shape_cast %51 : vector<1x1x32xf32> to vector<1x32xf32>
    %53 = vector.shape_cast %50 : vector<1x32xf32> to vector<1x1x32xf32>
    tpu.vector_store %arg8[%c0_26, %c0_27, %c0_28], %53 {strides = array<i32>} : memref<2x1x32xf32, #tpu.memory_space<vmem>>, vector<1x1x32xf32>,
    %c1_29 = arith.constant 1 : index
    %c0_30 = arith.constant 0 : index
    %c0_31 = arith.constant 0 : index
    %54 = vector.load %arg2[%c1_29, %c0_30, %c0_31] : memref<2x32x96xf32, #tpu.memory_space<vmem>>, vector<1x32x96xf32>
    %55 = vector.shape_cast %54 : vector<1x32x96xf32> to vector<32x96xf32>
    %cst_32 = arith.constant dense<0.000000e+00> : vector<1x96xf32>
    %56 = tpu.matmul %50, %55, %cst_32 {dimension_numbers = #tpu.dot_dimension_numbers<[1], [0], [0], [1], [0, 0, 1, 1], [], []>} : vector<1x32xf32>, vector<32x96xf32>, vector<1x96xf32> -> vector<1x96xf32>
    %57 = arith.addf %56, %14 : vector<1x96xf32>
    %58 = vector.extract_strided_slice %57 {offsets = [0, 0], sizes = [1, 32], strides = [1, 1]} : vector<1x96xf32> to vector<1x32xf32>
    %59 = vector.extract_strided_slice %19 {offsets = [0, 0], sizes = [1, 32], strides = [1, 1]} : vector<1x96xf32> to vector<1x32xf32>
    %60 = arith.addf %58, %59 : vector<1x32xf32>
    %61 = arith.negf %60 : vector<1x32xf32>
    %62 = math.exp %61 : vector<1x32xf32>
    %cst_33 = arith.constant 1.000000e+00 : f32
    %63 = vector.broadcast %cst_33 : f32 to vector<1x32xf32>
    %64 = arith.addf %63, %62 : vector<1x32xf32>
    %65 = arith.divf %63, %64 : vector<1x32xf32>
    %66 = vector.extract_strided_slice %57 {offsets = [0, 32], sizes = [1, 32], strides = [1, 1]} : vector<1x96xf32> to vector<1x32xf32>
    %67 = vector.extract_strided_slice %19 {offsets = [0, 32], sizes = [1, 32], strides = [1, 1]} : vector<1x96xf32> to vector<1x32xf32>
    %68 = arith.addf %66, %67 : vector<1x32xf32>
    %69 = arith.negf %68 : vector<1x32xf32>
    %70 = math.exp %69 : vector<1x32xf32>
    %cst_34 = arith.constant 1.000000e+00 : f32
    %71 = vector.broadcast %cst_34 : f32 to vector<1x32xf32>
    %72 = arith.addf %71, %70 : vector<1x32xf32>
    %73 = arith.divf %71, %72 : vector<1x32xf32>
    %74 = vector.extract_strided_slice %57 {offsets = [0, 64], sizes = [1, 32], strides = [1, 1]} : vector<1x96xf32> to vector<1x32xf32>
    %75 = vector.extract_strided_slice %19 {offsets = [0, 64], sizes = [1, 32], strides = [1, 1]} : vector<1x96xf32> to vector<1x32xf32>
    %76 = arith.mulf %65, %75 : vector<1x32xf32>
    %77 = arith.addf %74, %76 : vector<1x32xf32>
    %78 = math.tanh %77 : vector<1x32xf32>
    %cst_35 = arith.constant 1.000000e+00 : f32
    %79 = vector.broadcast %cst_35 : f32 to vector<1x32xf32>
    %80 = arith.subf %79, %73 : vector<1x32xf32>
    %81 = arith.mulf %80, %78 : vector<1x32xf32>
    %82 = arith.mulf %73, %11 : vector<1x32xf32>
    %83 = arith.addf %81, %82 : vector<1x32xf32>
    %c1_36 = arith.constant 1 : index
    %c0_37 = arith.constant 0 : index
    %c0_38 = arith.constant 0 : index
    %84 = vector.load %arg8[%c1_36, %c0_37, %c0_38] : memref<2x1x32xf32, #tpu.memory_space<vmem>>, vector<1x1x32xf32>
    %85 = vector.shape_cast %84 : vector<1x1x32xf32> to vector<1x32xf32>
    %86 = vector.shape_cast %83 : vector<1x32xf32> to vector<1x1x32xf32>
    tpu.vector_store %arg8[%c1_36, %c0_37, %c0_38], %86 {strides = array<i32>} : memref<2x1x32xf32, #tpu.memory_space<vmem>>, vector<1x1x32xf32>,
    %c0_39 = arith.constant 0 : index
    %c0_40 = arith.constant 0 : index
    %87 = vector.load %arg5[%c0_39, %c0_40] : memref<32x16xf32, #tpu.memory_space<vmem>>, vector<32x16xf32>
    %cst_41 = arith.constant dense<0.000000e+00> : vector<1x16xf32>
    %88 = tpu.matmul %83, %87, %cst_41 {dimension_numbers = #tpu.dot_dimension_numbers<[1], [0], [0], [1], [0, 0, 1, 1], [], []>} : vector<1x32xf32>, vector<32x16xf32>, vector<1x16xf32> -> vector<1x16xf32>
    %c0_42 = arith.constant 0 : index
    %c0_43 = arith.constant 0 : index
    %89 = vector.load %arg6[%c0_42, %c0_43] : memref<1x16xf32, #tpu.memory_space<vmem>>, vector<1x16xf32>
    %90 = arith.addf %88, %89 : vector<1x16xf32>
    %c0_44 = arith.constant 0 : index
    %c0_45 = arith.constant 0 : index
    %91 = vector.load %arg7[%c0_44, %c0_45] : memref<1x16xf32, #tpu.memory_space<vmem>>, vector<1x16xf32>
    tpu.vector_store %arg7[%c0_44, %c0_45], %90 {strides = array<i32>} : memref<1x16xf32, #tpu.memory_space<vmem>>, vector<1x16xf32>,
    return
  }
}

</mosaic_0001>

<bundles_post_ra>
// kernel: _step.1
= control target key start
LH: loop header
LB: loop body
LE: loop exit
PB: predicated region body
PF: predicated region fallthrough
CT: control target
= control target key end

     0   :  { %14 = vsyncpa [#allocation3], 0  ;;  %s644_s0 = inlined_call_operand.vmem [shape: f32[1,32], index: 0, kind: input, shape index: {}]   ;;  %s645_s1 = inlined_call_operand.hbm [shape: f32[2,1,32], index: 1, kind: input, shape index: {}, may-alias: {1,8}]   ;;  %s646_s2 = inlined_call_operand.hbm [shape: f32[2,32,96], index: 2, kind: input, shape index: {}]   ;;  %s647_s3 = inlined_call_operand.hbm [shape: f32[2,32,96], index: 3, kind: input, shape index: {}]   ;;  %s648_s4 = inlined_call_operand.vmem [shape: f32[2,2,96], index: 4, kind: input, shape index: {}]   ;;  %s649_s5 = inlined_call_operand.vmem [shape: f32[32,16], index: 5, kind: input, shape index: {}]   ;;  %s650_s6 = inlined_call_operand.vmem [shape: f32[1,16], index: 6, kind: input, shape index: {}]   ;;  %s651_s7 = inlined_call_operand.hbm [shape: f32[1,16], index: 7, kind: output, shape index: {0}]   ;;  %s652_s8 = inlined_call_operand.hbm [shape: f32[2,1,32], index: 8, kind: output, shape index: {1}, may-alias: {1,8}]  }
   0x1   :  { %15 = vsyncpa [#allocation6], 0 }
   0x2   :  { %16 = vsyncpa [#allocation4], 0  ;;  %s37_s29 = sshll.u32 %s646_s2, 4  ;;  %s38_s29 = int_to_ptr.hbm [resolvable:$true] %s37_s29 }
   0x3   :  { %17 = vsyncpa [#allocation10], 0  ;;  %s525_s30 = smov [#allocation5]   ;;  %s24_s12 = sshll.u32 %s645_s1, 4  ;;  %s25_s12 = int_to_ptr.hbm [resolvable:$true] %s24_s12 }
   0x4   :  { %s39_s9 = sshll.u32 %s525_s30, 4  ;;  %s526_s13 = smov 128   ;;  %s40_s9 = int_to_ptr.vmem [resolvable:$true] %s39_s9 }
   0x5   :  { %s527_s14 = smov 8   ;;  %s528_s15 = smov [#allocation2]  }
   0x6   :  { %45 = dma.hbm_to_vmem [thread:$0]  %s38_s29, 1024, %s40_s9, [#allocation6], %s526_s13, %s526_s13, %s527_s14  }
   0x7   :  { %s26_s16 = sshll.u32 %s528_s15, 4  ;;  %s529_s17 = smov 16   ;;  %s27_s16 = int_to_ptr.vmem [resolvable:$true] %s26_s16 }
   0x8   :  { %s530_s18 = smov 1   ;;  %s50_s20 = sshll.u32 %s647_s3, 4  ;;  %s51_s20 = int_to_ptr.hbm [resolvable:$true] %s50_s20 }
   0x9   :  { %32 = dma.hbm_to_vmem [thread:$0]  %s25_s12, 32, %s27_s16, [#allocation3], %s529_s17, %s529_s17, %s530_s18  }
   0xa   :  { %s531_s21 = smov [#allocation7]  }
   0xb   :  { %s52_s1 = sshll.u32 %s531_s21, 4  ;;  %s53_s1 = int_to_ptr.vmem [resolvable:$true] %s52_s1 }
   0xc   :  { %58 = dma.hbm_to_vmem [thread:$0]  %s51_s20, 1024, %s53_s1, [#allocation6], %s526_s13, %s526_s13, %s527_s14  }
   0xd   :  { %517 = dma.done.wait [#allocation3], 32  }
   0xe   :  { %518 = vsyncadd [#allocation3], 4294967264 }
   0xf   :  { %519 = dma.done.wait [#allocation6], 2048  }
  0x10   :  { %520 = vsyncadd [#allocation6], 4294965248  ;;  %v82_v0 = vld [vmem:[#allocation7 + $0x18] sm:$0xff]  ;;  %v81_v2 = vld [vmem:[#allocation7 + $0x10] sm:$0xff]  ;;  %vm86_vm0 = vcmask 261120   ;;  %s532_s25 = smov 64  }
  0x11   :  { %v149_v1 = vld [vmem:[#allocation5 + $0x18] sm:$0xff]  ;;  %102 = vmatpush.msra.mxu0 %v82_v0  ;;  %v148_v3 = vld [vmem:[#allocation5 + $0x10] sm:$0xff]  ;;  %v80_v4 = vld [vmem:[#allocation7 + $0x8] sm:$0xff]  ;;  %s534_s26 = smov 32   ;;  %vm220_vm5 = vcmask 253952   ;;  %s535_s14 = smov [#allocation9]  }
  0x12   :  { %165 = vmatpush.msra.mxu2 %v149_v1  ;;  %v147_v5 = vld [vmem:[#allocation5 + $0x8] sm:$0xff]  ;;  %v79_v6 = vld [vmem:[#allocation7] sm:$0xff]  ;;  %v77_v8 = vld [vmem:[#allocation2] sm:$0x1]  ;;  %s342_s15 = sshll.u32 %s535_s14, 4  ;;  %s536_s21 = smov [#allocation8]   ;;  %s343_s15 = int_to_ptr.vmem [resolvable:$true] %s342_s15 }
  0x13   :  { %103 = vmatpush.msra.mxu0 %v81_v2  ;;  %v146_v7 = vld [vmem:[#allocation5] sm:$0xff]  ;;  %v145_v9 = vld [vmem:[%s644_s0] sm:$0x1]  ;;  %s533_s0 = smov 96   ;;  %v117_v37 = vld [vmem:[#allocation7 + $0x30] sm:$0xff]  ;;  %s332_s1 = sshll.u32 %s536_s21, 4  ;;  %s333_s1 = int_to_ptr.vmem [resolvable:$true] %s332_s1 }
  0x14   :  { %166 = vmatpush.msra.mxu2 %v148_v3  ;;  %v78_v10 = vld [vmem:[%s648_s4] sm:$0x3]  ;;  %v116_v38 = vld [vmem:[#allocation7 + $0x28] sm:$0xff]  ;;  %v225_v40 = vld [vmem:[#allocation5 + $0x30] sm:$0xff]  ;;  %s334_s23 = sshll.u32 %s651_s7, 4  ;;  %vm325_vm10 = vcmask 122880   ;;  %s335_s23 = int_to_ptr.hbm [resolvable:$true] %s334_s23 }
  0x15   :  { %104 = vmatpush.msra.mxu0 %v80_v4  ;;  %v84_v11 = vrot.slane %v78_v10, 1  ;;  %v383_v35 = vld [vmem:[#allocation2] ss:$0 sm:$0xff]  ;;  %v115_v41 = vld [vmem:[#allocation7 + $0x20] sm:$0xff]  ;;  %v224_v42 = vld [vmem:[#allocation5 + $0x28] sm:$0xff] }
  0x16   :  { %167 = vmatpush.msra.mxu2 %v147_v5  ;;  %v118_v36 = vld [vmem:[#allocation7 + $0x38] sm:$0xff]  ;;  %v223_v44 = vld [vmem:[#allocation5 + $0x20] sm:$0xff] }
  0x17   :  { %105 = vmatpush.msra.mxu0 %v79_v6  ;;  %137 = vmatpush.msra.mxu1 %v118_v36  ;;  %v226_v39 = vld [vmem:[#allocation5 + $0x38] sm:$0xff]  ;;  %v364_v52 = vld [vmem:[%s648_s4 + $0x2] sm:$0x3] }
  0x18   :  { %168 = vmatpush.msra.mxu2 %v146_v7  ;;  %363 = vmatmul.msk.f32.vlgmr.msra.gmra.mxu0 %vm86_vm0, %v77_v8  ;;  %v111_v43 = vld [vmem:[#allocation2 + $0x1] sm:$0x1]  ;;  %v120_v53 = vrot.slane %v364_v52, 1 }
  0x19   :  { %366 = vmatmul.msk.f32.vlgmr.msra.gmra.mxu2 %vm86_vm0, %v145_v9  ;;  %138 = vmatpush.msra.mxu1 %v117_v37  ;;  %v384_v56 = vld [vmem:[#allocation2 + $0x1] ss:$0 sm:$0xff] }
  0x1a   :  { %241 = vmatpush.msra.mxu3 %v226_v39 }
  0x1b   :  { %139 = vmatpush.msra.mxu1 %v116_v38 }
  0x1c   :  { %242 = vmatpush.msra.mxu3 %v225_v40 }
  0x1d   :  { %140 = vmatpush.msra.mxu1 %v115_v41 }
  0x1e   :  { %243 = vmatpush.msra.mxu3 %v224_v42  ;;  %365 = vmatmul.msk.f32.vlgmr.msra.gmra.mxu1 %vm86_vm0, %v111_v43 }
  0x20   :  { %244 = vmatpush.msra.mxu3 %v223_v44 }
  0x95   :  { %v107_v12 = vpop.f32.mrf.mxu0 }
  0x96   :  { %v108_v13 = vadd.f32 %v107_v12, %v84_v11 }
  0x98   :  { %194 = vrot.lane.b32.xlu0 %v108_v13, %s532_s25 }
  0x9b   :  { %v142_v54 = vpop.f32.mrf.mxu1 }
  0x9c   :  { %v170_v14 = vpop.f32.mrf.mxu2  ;;  %v143_v55 = vadd.f32 %v142_v54, %v120_v53 }
  0x9d   :  { %v171_v15 = vadd.f32 %v170_v14, %v78_v10  ;;  %v301_v14 = vld [vmem:[%s649_s5 + $0x18] sm:$0xff] }
  0x9e   :  { %317 = vmatpush.msrb.mxu0 %v301_v14 }
  0x9f   :  { %v173_v16 = vadd.f32 %v171_v15, %v108_v13 }
  0xa1   :  { %v367_v17 = vmul.f32 -1.442695, %v173_v16  ;;  %v299_v16 = vld [vmem:[%s649_s5 + $0x8] sm:$0xff] }
  0xa3   :  { %385 = vpow2.f32 %v367_v17  ;;  %v298_v17 = vld [vmem:[%s649_s5] sm:$0xff] }
  0xa9   :  { %v386_v18 = vpop.eup %385 }
  0xaa   :  { %v177_v19 = vadd.f32 1.0, %v386_v18 }
  0xac   :  { %387 = vrcp.f32 %v177_v19  ;;  %v189_v25 = vand.u32 2147483648, %v177_v19  ;;  %vm183_vm2 = vweird.f32 %v177_v19  ;;  %v187_v26 = vand.u32 2147483647, %v177_v19 }
  0xae   :  { %v190_v28 = vor.u32 1.1754944e-38, %v189_v25  ;;  %vm188_vm4 = vcmp.eq.f32.partialorder %v187_v26, 8.507059e+37  ;;  %v302_v25 = vld [vmem:[%s650_s6] sm:$0x1] }
  0xb2   :  { %v388_v20 = vpop.eup %387 }
  0xb3   :  { %v179_v21 = vmul.f32 %v388_v20, %v177_v19  ;;  %vm184_vm1 = vweird.f32 %v388_v20 }
  0xb4   :  { %vm185_vm3 = vmor %vm183_vm2, %vm184_vm1 }
  0xb5   :  { %v180_v22 = vsub.f32 1.0, %v179_v21 }
  0xb7   :  { %v181_v23 = vmul.f32 %v388_v20, %v180_v22 }
  0xb9   :  { %v182_v24 = vadd.f32 %v388_v20, %v181_v23 }
  0xbb   :  { %v186_v27 = vsel %vm185_vm3, %v388_v20, %v182_v24 }
  0xbc   :  { %v191_v30 = vsel %vm188_vm4, %v190_v28, %v186_v27 }
  0xbd   :  { %v204_v46 = vsub.f32 1.0, %v191_v30 }
 0x10a   :  { %v195_v29 = vpop.permute.xlu0 %194 }
 0x10b   :  { %v197_v31 = vmul.f32 %v195_v29, %v191_v30 }
 0x10d   :  { %199 = vrot.lane.b32.xlu0 %v197_v31, %s532_s25 }
 0x17f   :  { %v200_v32 = vpop.permute.xlu0 %199 }
 0x180   :  { %v202_v33 = vadd.f32 %v200_v32, %v171_v15  ;;  %v300_v15 = vld [vmem:[%s649_s5 + $0x10] sm:$0xff]  ;;  %s344_s5 = sshll.u32 %s652_s8, 4  ;;  %s345_s5 = int_to_ptr.hbm [resolvable:$true] %s344_s5 }
 0x181   :  { %318 = vmatpush.msrb.mxu0 %v300_v15 }
 0x182   :  { %389 = vtanh.f32 %v202_v33 }
 0x183   :  { %319 = vmatpush.msrb.mxu0 %v299_v16 }
 0x185   :  { %320 = vmatpush.msrb.mxu0 %v298_v17 }
 0x188   :  { %v390_v34 = vpop.eup %389 }
 0x189   :  { %206 = vrot.lane.b32.xlu1 %v390_v34, %s533_s0 }
 0x191   :  { %211 = vrot.lane.b32.xlu1 %v383_v35, %s534_s26 }
 0x1fb   :  { %v207_v45 = vpop.permute.xlu1 %206 }
 0x1fc   :  { %v209_v48 = vmul.f32 %v207_v45, %v204_v46 }
 0x203   :  { %v212_v47 = vpop.permute.xlu1 %211 }
 0x204   :  { %v214_v49 = vmul.f32 %v212_v47, %v191_v30 }
 0x206   :  { %v215_v50 = vadd.f32 %v214_v49, %v209_v48 }
 0x208   :  { %217 = vrot.lane.b32.xlu2 %v215_v50, %s533_s0 }
 0x210   :  { %270 = vrot.lane.b32.xlu2 %v143_v55, %s532_s25 }
 0x218   :  { %287 = vrot.lane.b32.xlu2 %v384_v56, %s534_s26 }
 0x262   :  { %v218_v51 = vpop.permute.xlu2 %217 }
 0x263   :  { %221 = vst.msk [vmem:[#allocation9] sm:$0x1] %vm220_vm5, %v218_v51  ;;  %368 = vmatmul.msk.f32.vlgmr.msra.gmra.mxu3 %vm86_vm0, %v218_v51 }
 0x26a   :  { %v271_v9 = vpop.permute.xlu2 %270 }
 0x272   :  { %v288_v18 = vpop.permute.xlu2 %287 }
 0x2e6   :  { %v246_v57 = vpop.f32.mrf.mxu3 }
 0x2e7   :  { %v247_v58 = vadd.f32 %v364_v52, %v246_v57 }
 0x2e9   :  { %v249_v59 = vadd.f32 %v247_v58, %v143_v55 }
 0x2eb   :  { %v369_v60 = vmul.f32 -1.442695, %v249_v59 }
 0x2ed   :  { %391 = vpow2.f32 %v369_v60 }
 0x2f3   :  { %v392_v61 = vpop.eup %391 }
 0x2f4   :  { %v253_v62 = vadd.f32 1.0, %v392_v61 }
 0x2f6   :  { %393 = vrcp.f32 %v253_v62  ;;  %v265_v2 = vand.u32 2147483648, %v253_v62  ;;  %v263_v4 = vand.u32 2147483647, %v253_v62  ;;  %vm259_vm7 = vweird.f32 %v253_v62 }
 0x2f8   :  { %v266_v6 = vor.u32 1.1754944e-38, %v265_v2  ;;  %vm264_vm9 = vcmp.eq.f32.partialorder %v263_v4, 8.507059e+37 }
 0x2fc   :  { %v394_v63 = vpop.eup %393 }
 0x2fd   :  { %v255_v0 = vmul.f32 %v394_v63, %v253_v62  ;;  %vm260_vm6 = vweird.f32 %v394_v63 }
 0x2fe   :  { %vm261_vm8 = vmor %vm259_vm7, %vm260_vm6 }
 0x2ff   :  { %v256_v1 = vsub.f32 1.0, %v255_v0 }
 0x301   :  { %v257_v3 = vmul.f32 %v394_v63, %v256_v1 }
 0x303   :  { %v258_v5 = vadd.f32 %v394_v63, %v257_v3 }
 0x305   :  { %v262_v7 = vsel %vm261_vm8, %v394_v63, %v258_v5 }
 0x306   :  { %v267_v8 = vsel %vm264_vm9, %v266_v6, %v262_v7 }
 0x307   :  { %v273_v10 = vmul.f32 %v271_v9, %v267_v8  ;;  %v280_v19 = vsub.f32 1.0, %v267_v8  ;;  %v290_v21 = vmul.f32 %v288_v18, %v267_v8 }
 0x309   :  { %275 = vrot.lane.b32.xlu0 %v273_v10, %s532_s25 }
 0x37b   :  { %v276_v11 = vpop.permute.xlu0 %275 }
 0x37c   :  { %v278_v12 = vadd.f32 %v276_v11, %v247_v58 }
 0x37e   :  { %395 = vtanh.f32 %v278_v12 }
 0x384   :  { %v396_v13 = vpop.eup %395 }
 0x385   :  { %282 = vrot.lane.b32.xlu1 %v396_v13, %s533_s0 }
 0x3f7   :  { %v283_v20 = vpop.permute.xlu1 %282 }
 0x3f8   :  { %v285_v22 = vmul.f32 %v283_v20, %v280_v19 }
 0x3fa   :  { %v291_v23 = vadd.f32 %v290_v21, %v285_v22 }
 0x3fc   :  { %293 = vrot.lane.b32.xlu0 %v291_v23, %s533_s0 }
 0x46e   :  { %v294_v24 = vpop.permute.xlu0 %293 }
 0x46f   :  { %297 = vst.msk [vmem:[#allocation9 + $0x1] sm:$0x1] %vm220_vm5, %v294_v24  ;;  %370 = vmatmul.msk.f32.vlgmr.msrb.gmra.mxu0 %vm86_vm0, %v294_v24 }
 0x470   :  { %350 = dma.vmem_to_hbm [thread:$0]  %s343_s15, 32, %s345_s5, [#allocation10], %s529_s17, %s529_s17, %s530_s18  }
 0x4ec   :  { %v322_v26 = vpop.f32.mrf.mxu0 }
 0x4ed   :  { %v323_v27 = vadd.f32 %v322_v26, %v302_v25 }
 0x4ef   :  { %326 = vst.msk [vmem:[#allocation8] sm:$0x1] %vm325_vm10, %v323_v27 }
 0x4f0   :  { %337 = dma.vmem_to_hbm [thread:$0]  %s333_s1, 16, %s335_s23, [#allocation4]  }
 0x4f1   :  { %521 = dma.done.wait [#allocation4], 16  }
 0x4f2   :  { %522 = vsyncadd [#allocation4], 4294967280 }
 0x4f3   :  { %523 = dma.done.wait [#allocation10], 32  }
 0x4f4   :  { %524 = vsyncadd [#allocation10], 4294967264 }
 0x4f5   :  { %359 = vsyncpa [#allocation3], 1 }
 0x4f6   :  { %360 = vsyncpa [#allocation6], 1 }
 0x4f7   :  { %361 = vsyncpa [#allocation4], 1 }
 0x4f8   :  { %362 = vsyncpa [#allocation10], 1 }

</bundles_post_ra>
